<compile_context>
chip_gen: v5e
topology: v5e:2x2
jax: 0.10.0
libtpu: 0.0.40
codegen_flags: <defaults>
</compile_context>

<pallas_src>
import functools

import jax
import jax.numpy as jnp
from jax.experimental import pallas as pl
from jax.experimental.pallas import tpu as pltpu

_MIB = 1024 * 1024
_HIGHEST = jax.lax.Precision.HIGHEST


# --------------------------------------------------------------------------
# Per-generation policy
# --------------------------------------------------------------------------
def _chip_policy():
    """Returns (block_budget_bytes, vmem_limit_bytes, two_tensorcores)."""
    kind = ""
    try:
        kind = jax.devices()[0].device_kind.lower()
    except Exception:
        pass
    if "v7" in kind or "7x" in kind:
        # 64 MiB physical VMEM per TC, 2 TensorCores per chip.
        return 36 * _MIB, 48 * _MIB, True
    if "v6" in kind:
        # 128 MiB physical VMEM, 1 TensorCore.
        return 48 * _MIB, 64 * _MIB, False
    if "v5" in kind:
        # 16 MiB scoped default; stay inside it.
        return 12 * _MIB, 16 * _MIB, False
    # Unknown generation: conservative (fits every scoped default).
    return 12 * _MIB, 16 * _MIB, False


def _plan_fused_batch_tile(B, C, HW_pad, itemsize, budget, two_cores):
    """Batch tile for the fused path, or None if even tb=1 is over budget."""
    per_batch = 4 * C * HW_pad * itemsize  # in + out blocks, double-buffered
    if per_batch > budget:
        return None
    tb = max(1, min(B, budget // per_batch))
    if two_cores and B >= 2:
        # Keep >= 2 grid steps so both TensorCores get work, and make the step
        # count even so neither core idles for a whole block.
        tb = min(tb, pl.cdiv(B, 2))
        while tb > 1 and pl.cdiv(B, tb) % 2 != 0:
            tb -= 1
    return tb


def _plan_hw_chunk(B, C, HW_pad, itemsize, budget):
    """HW chunk (multiple of 128 that divides HW_pad) for the fallback path."""
    n128 = HW_pad // 128
    per_chunk = 4 * B * C * 128 * itemsize  # in + out blocks, double-buffered
    cap = max(1, budget // per_chunk)
    best = 1
    for d in range(1, n128 + 1):
        if n128 % d == 0 and d <= cap:
            best = d
    # TODO(synk): if even a single 128-lane chunk (or the (B, C) gate) exceeds
    # the budget for extreme B*C, a further batch split would be needed here.
    return best * 128


# --------------------------------------------------------------------------
# Kernels
# --------------------------------------------------------------------------
def _se_fused_kernel(x_ref, w1_ref, b1_ref, w2_ref, b2_ref, o_ref, *, inv_hw):
    # Squeeze: global average pool over the lane-dense spatial axis, f32 acc.
    # (A dot-with-ones MXU variant is a possible micro-opt if this XLU reduce
    #  ever shows up on the critical path in a bundle dump.)
    y = jnp.sum(x_ref[...], axis=-1, dtype=jnp.float32) * inv_hw        # (tb, C)

    # Excitation: Linear -> ReLU -> Linear -> Sigmoid on the MXU.
    h = jnp.dot(y, w1_ref[...], preferred_element_type=jnp.float32,
                precision=_HIGHEST) + b1_ref[...]
    h = jnp.maximum(h, 0.0)
    z = jnp.dot(h, w2_ref[...], preferred_element_type=jnp.float32,
                precision=_HIGHEST) + b2_ref[...]
    gate = jax.nn.sigmoid(z).astype(o_ref.dtype)                        # (tb, C)

    # Scale: explicit second read of x (bounds vreg live ranges at large tb).
    o_ref[...] = x_ref[...] * gate[:, :, None]


def _se_pool_gate_kernel(x_ref, w1_ref, b1_ref, w2_ref, b2_ref, g_ref, *, inv_hw):
    """Fallback phase 1: accumulate per-channel sums across HW tiles into the
    resident gate output; compute the excitation MLP on the final step."""
    @pl.when(pl.program_id(0) == 0)
    def _():
        g_ref[...] = jnp.zeros_like(g_ref)

    g_ref[...] += jnp.sum(x_ref[...], axis=-1, dtype=jnp.float32)       # (B, C)

    @pl.when(pl.program_id(0) == pl.num_programs(0) - 1)
    def _():
        y = g_ref[...] * inv_hw
        h = jnp.dot(y, w1_ref[...], preferred_element_type=jnp.float32,
                    precision=_HIGHEST) + b1_ref[...]
        h = jnp.maximum(h, 0.0)
        z = jnp.dot(h, w2_ref[...], preferred_element_type=jnp.float32,
                    precision=_HIGHEST) + b2_ref[...]
        g_ref[...] = jax.nn.sigmoid(z)


def _se_scale_kernel(x_ref, g_ref, o_ref):
    """Fallback phase 2: apply the finished gate per HW tile."""
    o_ref[...] = x_ref[...] * g_ref[...].astype(o_ref.dtype)[:, :, None]


# --------------------------------------------------------------------------
# Wrapper
# --------------------------------------------------------------------------
def se_block(x_nchw, w1, b1, w2, b2, *, force_fallback=False):
    """SEBlock forward. x_nchw: (B,C,H,W); w1:(C,Cr) b1:(Cr,) w2:(Cr,C) b2:(C,)."""
    B, C, H, W = x_nchw.shape
    Cr = w1.shape[1]
    HW = H * W
    inv_hw = float(1.0 / HW)
    itemsize = jnp.dtype(x_nchw.dtype).itemsize

    budget, vmem_limit, two_cores = _chip_policy()

    # Lane-density guard: pad HW up to a multiple of 128 (zeros; unbiased
    # because the mean multiplies by 1 / true HW), slice back afterwards.
    HW_pad = pl.cdiv(HW, 128) * 128
    x3 = x_nchw.reshape(B, C, HW)
    if HW_pad != HW:
        x3 = jnp.pad(x3, ((0, 0), (0, 0), (0, HW_pad - HW)))

    b1_2d = b1.reshape(1, Cr)
    b2_2d = b2.reshape(1, C)
    w_specs = [
        pl.BlockSpec((C, Cr), lambda *_: (0, 0)),   # w1 (resident across grid)
        pl.BlockSpec((1, Cr), lambda *_: (0, 0)),   # b1
        pl.BlockSpec((Cr, C), lambda *_: (0, 0)),   # w2
        pl.BlockSpec((1, C), lambda *_: (0, 0)),    # b2
    ]

    tb = None if force_fallback else _plan_fused_batch_tile(
        B, C, HW_pad, itemsize, budget, two_cores)

    if tb is not None:
        # ---------------- Fused single-kernel path ----------------
        steps = pl.cdiv(B, tb)
        B_pad = steps * tb
        x_in = x3
        if B_pad != B:   # host-side zero pad -> no partial blocks
            x_in = jnp.pad(x3, ((0, B_pad - B), (0, 0), (0, 0)))

        kernel = functools.partial(_se_fused_kernel, inv_hw=inv_hw)
        out = pl.pallas_call(
            kernel,
            out_shape=jax.ShapeDtypeStruct((B_pad, C, HW_pad), x_nchw.dtype),
            grid_spec=pltpu.PrefetchScalarGridSpec(
                num_scalar_prefetch=0,
                grid=(steps,),
                in_specs=[pl.BlockSpec((tb, C, HW_pad), lambda i: (i, 0, 0))]
                         + w_specs,
                out_specs=pl.BlockSpec((tb, C, HW_pad), lambda i: (i, 0, 0)),
            ),
            compiler_params=pltpu.CompilerParams(
                dimension_semantics=("parallel",),
                vmem_limit_bytes=vmem_limit,
            ),
        )(x_in, w1, b1_2d, w2, b2_2d)
        out = out[:B, :, :HW]
    else:
        # ---------------- HW-chunked two-phase fallback ----------------
        thw = _plan_hw_chunk(B, C, HW_pad, itemsize, budget)
        n_hw = HW_pad // thw

        pool_kernel = functools.partial(_se_pool_gate_kernel, inv_hw=inv_hw)
        gate = pl.pallas_call(
            pool_kernel,
            out_shape=jax.ShapeDtypeStruct((B, C), jnp.float32),
            grid_spec=pltpu.PrefetchScalarGridSpec(
                num_scalar_prefetch=0,
                grid=(n_hw,),
                in_specs=[pl.BlockSpec((B, C, thw), lambda h: (0, 0, h))]
                         + w_specs,
                out_specs=pl.BlockSpec((B, C), lambda h: (0, 0)),
            ),
            compiler_params=pltpu.CompilerParams(
                dimension_semantics=("arbitrary",),
                vmem_limit_bytes=vmem_limit,
            ),
        )(x3, w1, b1_2d, w2, b2_2d)

        out = pl.pallas_call(
            _se_scale_kernel,
            out_shape=jax.ShapeDtypeStruct((B, C, HW_pad), x_nchw.dtype),
            grid_spec=pltpu.PrefetchScalarGridSpec(
                num_scalar_prefetch=0,
                grid=(n_hw,),
                in_specs=[
                    pl.BlockSpec((B, C, thw), lambda h: (0, 0, h)),
                    pl.BlockSpec((B, C), lambda h: (0, 0)),
                ],
                out_specs=pl.BlockSpec((B, C, thw), lambda h: (0, 0, h)),
            ),
            compiler_params=pltpu.CompilerParams(
                dimension_semantics=("parallel",),
                vmem_limit_bytes=vmem_limit,
            ),
        )(x3, gate)
        out = out[:, :, :HW]

    return out.reshape(B, C, H, W)


def se_block_ref(x_nchw, w1, b1, w2, b2):
    """Plain-JAX reference mirroring the PyTorch forward."""
    y = jnp.mean(x_nchw.astype(jnp.float32), axis=(2, 3))               # (B, C)
    h = jnp.maximum(jnp.dot(y, w1, precision=_HIGHEST) + b1, 0.0)       # (B, Cr)
    s = jax.nn.sigmoid(jnp.dot(h, w2, precision=_HIGHEST) + b2)         # (B, C)
    return x_nchw * s.astype(x_nchw.dtype)[:, :, None, None]


if __name__ == "__main__":
    root = jax.random.PRNGKey(0)
    key_a, key_b = jax.random.split(root, 2)

    def make_inputs(key, B, C, H, W, reduction):
        Cr = max(C // reduction, 1)
        kx, k1, k2, k3, k4 = jax.random.split(key, 5)
        x = jax.random.normal(kx, (B, C, H, W), dtype=jnp.float32)
        # Deterministic synthetic parameters (nn.Linear weights pre-transposed).
        w1 = jax.random.normal(k1, (C, Cr), dtype=jnp.float32) * 0.1
        b1 = jax.random.normal(k2, (Cr,), dtype=jnp.float32) * 0.1
        w2 = jax.random.normal(k3, (Cr, C), dtype=jnp.float32) * 0.1
        b2 = jax.random.normal(k4, (C,), dtype=jnp.float32) * 0.1
        return x, w1, b1, w2, b2

    # Primary: SEBlock(channel=64, reduction=16) on a lane-dense 16x16 map.
    x, w1, b1, w2, b2 = make_inputs(key_a, 4, 64, 16, 16, 16)
    out = jax.block_until_ready(se_block(x, w1, b1, w2, b2))
    ref = se_block_ref(x, w1, b1, w2, b2)
    assert out.shape == x.shape
    assert jnp.allclose(out, ref, atol=1e-5, rtol=1e-5), "fused path mismatch"

    # Non-lane-dense 7x7 map with odd batch: exercises HW zero-padding and the
    # cdiv grid / host-side batch pad / even-step policy.
    x, w1, b1, w2, b2 = make_inputs(key_b, 3, 32, 7, 7, 16)
    out = jax.block_until_ready(se_block(x, w1, b1, w2, b2))
    ref = se_block_ref(x, w1, b1, w2, b2)
    assert jnp.allclose(out, ref, atol=1e-5, rtol=1e-5), "padded path mismatch"

    # Force the large-C*HW fallback (HW-chunked, two-phase) path.
    out = jax.block_until_ready(se_block(x, w1, b1, w2, b2, force_fallback=True))
    assert jnp.allclose(out, ref, atol=1e-5, rtol=1e-5), "fallback path mismatch"

    print("KERNEL_OK")
</pallas_src>

<mosaic_0001>
module attributes {stable_mosaic.version = 11 : i64} {
  func.func @_se_fused_kernel(%arg0: i32, %arg1: memref<4x64x256xf32, #tpu.memory_space<vmem>>, %arg2: memref<64x4xf32, #tpu.memory_space<vmem>>, %arg3: memref<1x4xf32, #tpu.memory_space<vmem>>, %arg4: memref<4x64xf32, #tpu.memory_space<vmem>>, %arg5: memref<1x64xf32, #tpu.memory_space<vmem>>, %arg6: memref<4x64x256xf32, #tpu.memory_space<vmem>>) attributes {dimension_semantics = [#tpu.dimension_semantics<parallel>], iteration_bounds = array<i64: 1>, scalar_prefetch = 0 : i64, scratch_operands = 0 : i64, tpu.core_type = #tpu.core_type<tc>, window_params = [{transform_indices = @transform_0, window_bounds = array<i64: 4, 64, 256>}, {pipeline_mode = #tpu.pipeline_mode<synchronous>, transform_indices = @transform_1, window_bounds = array<i64: 64, 4>}, {pipeline_mode = #tpu.pipeline_mode<synchronous>, transform_indices = @transform_2, window_bounds = array<i64: 1, 4>}, {pipeline_mode = #tpu.pipeline_mode<synchronous>, transform_indices = @transform_3, window_bounds = array<i64: 4, 64>}, {pipeline_mode = #tpu.pipeline_mode<synchronous>, transform_indices = @transform_4, window_bounds = array<i64: 1, 64>}, {transform_indices = @transform_5, window_bounds = array<i64: 4, 64, 256>}]} {
    %c0 = arith.constant 0 : index
    %c0_0 = arith.constant 0 : index
    %c0_1 = arith.constant 0 : index
    %0 = vector.load %arg1[%c0, %c0_0, %c0_1] : memref<4x64x256xf32, #tpu.memory_space<vmem>>, vector<4x64x256xf32>
    %cst = arith.constant dense<0.000000e+00> : vector<4x64xf32>
    %1 = vector.multi_reduction <add>, %0, %cst [2] : vector<4x64x256xf32> to vector<4x64xf32>
    %cst_2 = arith.constant 3.906250e-03 : f32
    %2 = vector.broadcast %cst_2 : f32 to vector<4x64xf32>
    %3 = arith.mulf %1, %2 : vector<4x64xf32>
    %c0_3 = arith.constant 0 : index
    %c0_4 = arith.constant 0 : index
    %4 = vector.load %arg2[%c0_3, %c0_4] : memref<64x4xf32, #tpu.memory_space<vmem>>, vector<64x4xf32>
    %cst_5 = arith.constant dense<0.000000e+00> : vector<4x4xf32>
    %5 = tpu.matmul %3, %4, %cst_5 {dimension_numbers = #tpu.dot_dimension_numbers<[1], [0], [0], [1], [0, 0, 1, 1], [], []>, precision = #tpu.contract_precision<fp32>} : vector<4x64xf32>, vector<64x4xf32>, vector<4x4xf32> -> vector<4x4xf32>
    %c0_6 = arith.constant 0 : index
    %c0_7 = arith.constant 0 : index
    %6 = vector.load %arg3[%c0_6, %c0_7] : memref<1x4xf32, #tpu.memory_space<vmem>>, vector<1x4xf32>
    %7 = vector.broadcast %6 : vector<1x4xf32> to vector<4x4xf32>
    %8 = arith.addf %5, %7 : vector<4x4xf32>
    %cst_8 = arith.constant 0.000000e+00 : f32
    %9 = vector.broadcast %cst_8 : f32 to vector<4x4xf32>
    %10 = arith.maximumf %8, %9 : vector<4x4xf32>
    %c0_9 = arith.constant 0 : index
    %c0_10 = arith.constant 0 : index
    %11 = vector.load %arg4[%c0_9, %c0_10] : memref<4x64xf32, #tpu.memory_space<vmem>>, vector<4x64xf32>
    %cst_11 = arith.constant dense<0.000000e+00> : vector<4x64xf32>
    %12 = tpu.matmul %10, %11, %cst_11 {dimension_numbers = #tpu.dot_dimension_numbers<[1], [0], [0], [1], [0, 0, 1, 1], [], []>, precision = #tpu.contract_precision<fp32>} : vector<4x4xf32>, vector<4x64xf32>, vector<4x64xf32> -> vector<4x64xf32>
    %c0_12 = arith.constant 0 : index
    %c0_13 = arith.constant 0 : index
    %13 = vector.load %arg5[%c0_12, %c0_13] : memref<1x64xf32, #tpu.memory_space<vmem>>, vector<1x64xf32>
    %14 = vector.broadcast %13 : vector<1x64xf32> to vector<4x64xf32>
    %15 = arith.addf %12, %14 : vector<4x64xf32>
    %16 = arith.negf %15 : vector<4x64xf32>
    %17 = math.exp %16 : vector<4x64xf32>
    %cst_14 = arith.constant 1.000000e+00 : f32
    %18 = vector.broadcast %cst_14 : f32 to vector<4x64xf32>
    %19 = arith.addf %18, %17 : vector<4x64xf32>
    %20 = arith.divf %18, %19 : vector<4x64xf32>
    %c0_15 = arith.constant 0 : index
    %c0_16 = arith.constant 0 : index
    %c0_17 = arith.constant 0 : index
    %21 = vector.load %arg1[%c0_15, %c0_16, %c0_17] : memref<4x64x256xf32, #tpu.memory_space<vmem>>, vector<4x64x256xf32>
    %22 = vector.shape_cast %20 : vector<4x64xf32> to vector<4x64x1xf32>
    %23 = vector.broadcast %22 : vector<4x64x1xf32> to vector<4x64x256xf32>
    %24 = arith.mulf %21, %23 : vector<4x64x256xf32>
    %c0_18 = arith.constant 0 : index
    %c0_19 = arith.constant 0 : index
    %c0_20 = arith.constant 0 : index
    %25 = vector.load %arg6[%c0_18, %c0_19, %c0_20] : memref<4x64x256xf32, #tpu.memory_space<vmem>>, vector<4x64x256xf32>
    tpu.vector_store %arg6[%c0_18, %c0_19, %c0_20], %24 {strides = array<i32>} : memref<4x64x256xf32, #tpu.memory_space<vmem>>, vector<4x64x256xf32>,
    return
  }
  func.func @transform_0(%arg0: i32) -> (i32, i32, i32) {
    %c0_i32 = arith.constant 0 : i32
    %c0_i32_0 = arith.constant 0 : i32
    %c0_i32_1 = arith.constant 0 : i32
    return %arg0, %c0_i32, %c0_i32_0 : i32, i32, i32
  }
  func.func @transform_1(%arg0: i32) -> (i32, i32) {
    %c0_i32 = arith.constant 0 : i32
    %c0_i32_0 = arith.constant 0 : i32
    %c0_i32_1 = arith.constant 0 : i32
    return %c0_i32, %c0_i32_0 : i32, i32
  }
  func.func @transform_2(%arg0: i32) -> (i32, i32) {
    %c0_i32 = arith.constant 0 : i32
    %c0_i32_0 = arith.constant 0 : i32
    %c0_i32_1 = arith.constant 0 : i32
    return %c0_i32, %c0_i32_0 : i32, i32
  }
  func.func @transform_3(%arg0: i32) -> (i32, i32) {
    %c0_i32 = arith.constant 0 : i32
    %c0_i32_0 = arith.constant 0 : i32
    %c0_i32_1 = arith.constant 0 : i32
    return %c0_i32, %c0_i32_0 : i32, i32
  }
  func.func @transform_4(%arg0: i32) -> (i32, i32) {
    %c0_i32 = arith.constant 0 : i32
    %c0_i32_0 = arith.constant 0 : i32
    %c0_i32_1 = arith.constant 0 : i32
    return %c0_i32, %c0_i32_0 : i32, i32
  }
  func.func @transform_5(%arg0: i32) -> (i32, i32, i32) {
    %c0_i32 = arith.constant 0 : i32
    %c0_i32_0 = arith.constant 0 : i32
    %c0_i32_1 = arith.constant 0 : i32
    return %arg0, %c0_i32, %c0_i32_0 : i32, i32, i32
  }
}

</mosaic_0001>

<bundles_post_ra>
// kernel: tpu_custom_call.1
= control target key start
LH: loop header
LB: loop body
LE: loop exit
PB: predicated region body
PF: predicated region fallthrough
CT: control target
= control target key end

     0   :  { %10 = vsyncpa [#allocation3], 0  ;;  %s1681_s0 = inlined_call_operand.hbm [shape: f32[4,64,256], index: 0, kind: input, shape index: {}]   ;;  %s1682_s1 = inlined_call_operand.vmem [shape: f32[64,4], index: 1, kind: input, shape index: {}]   ;;  %s1683_s2 = inlined_call_operand.vmem [shape: f32[1,4], index: 2, kind: input, shape index: {}]   ;;  %s1684_s3 = inlined_call_operand.vmem [shape: f32[4,64], index: 3, kind: input, shape index: {}]   ;;  %s1685_s4 = inlined_call_operand.vmem [shape: f32[1,64], index: 4, kind: input, shape index: {}]   ;;  %s1686_s5 = inlined_call_operand.hbm [shape: f32[4,64,256], index: 5, kind: output, shape index: {}]  }
   0x1   :  { %11 = vsyncpa [#allocation4], 0  ;;  %s16_s20 = sshll.u32 %s1681_s0, 4  ;;  %s1261_s21 = smov [#allocation2]   ;;  %s17_s20 = int_to_ptr.hbm [resolvable:$true] %s16_s20 }
   0x2   :  { %s18_s22 = sshll.u32 %s1261_s21, 4  ;;  %s1262_s23 = smov 256   ;;  %s19_s22 = int_to_ptr.vmem [resolvable:$true] %s18_s22 }
   0x3   :  { %s1263_s24 = smov 16  }
   0x4   :  { %24 = dma.hbm_to_vmem [thread:$0]  %s17_s20, 8192, %s19_s22, [#allocation3], %s1262_s23, %s1262_s23, %s1263_s24  }
   0x5   :  { %1257 = dma.done.wait [#allocation3], 8192  }
   0x6   :  { %1258 = vsyncadd [#allocation3], 4294959104  ;;  %v53_v0 = vld [vmem:[#allocation2 + $0x80] sm:$0xff]  ;;  %v54_v1 = vld [vmem:[#allocation2 + $0x88] sm:$0xff]  ;;  %vm278_vm0 = vcmask 130112   ;;  %vm282_vm1 = vcmask 195712  }
   0x7   :  { %v41_v2 = vld [vmem:[#allocation2 + $0x20] sm:$0xff]  ;;  %v125_v3 = vadd.f32 %v54_v1, %v53_v0  ;;  %v42_v4 = vld [vmem:[#allocation2 + $0x28] sm:$0xff]  ;;  %v55_v9 = vld [vmem:[#allocation2 + $0x90] sm:$0xff]  ;;  %vm286_vm2 = vcmask 261312   ;;  %vm290_vm3 = vcmask 326912   ;;  %vm294_vm4 = vcmask 392512  }
   0x8   :  { %v1301_v5 = vld [vmem:[#allocation2] sm:$0xff]  ;;  %v1303_v6 = vld [vmem:[#allocation2 + $0x8] sm:$0xff]  ;;  %v107_v7 = vadd.f32 %v42_v4, %v41_v2  ;;  %v56_v10 = vld [vmem:[#allocation2 + $0x98] sm:$0xff]  ;;  %vm298_vm5 = vcmask 458112   ;;  %vm302_vm6 = vcmask 523712   ;;  %vm349_vm7 = vcmask 1041409  }
   0x9   :  { %v101_v8 = vadd.f32 %v1303_v6, %v1301_v5  ;;  %126 = vadd.xlane.f32.xlu1 %v125_v3  ;;  %v57_v11 = vld [vmem:[#allocation2 + $0xa0] sm:$0xff]  ;;  %v58_v12 = vld [vmem:[#allocation2 + $0xa8] sm:$0xff]  ;;  %v39_v13 = vld [vmem:[#allocation2 + $0x10] sm:$0xff]  ;;  %v128_v15 = vadd.f32 %v56_v10, %v55_v9  ;;  %vm351_vm8 = vcmask 1042434   ;;  %vm353_vm9 = vcmask 1043459   ;;  %s1104_s21 = sshll.u32 %s1686_s5, 4  ;;  %s1105_s21 = int_to_ptr.hbm [resolvable:$true] %s1104_s21 }
   0xa   :  { %108 = vadd.xlane.f32.xlu2 %v107_v7  ;;  %v40_v14 = vld [vmem:[#allocation2 + $0x18] sm:$0xff]  ;;  %v131_v16 = vadd.f32 %v58_v12, %v57_v11  ;;  %v71_v18 = vld [vmem:[#allocation2 + $0x110] sm:$0xff]  ;;  %v69_v22 = vld [vmem:[#allocation2 + $0x100] sm:$0xff]  ;;  %vm355_vm10 = vcmask 523264   ;;  %vm605_vm11 = vcmask 1043456   ;;  %vm601_vm12 = vcmask 31744  }
   0xb   :  { %102 = vadd.xlane.f32.xlu0 %v101_v8  ;;  %v104_v17 = vadd.f32 %v40_v14, %v39_v13  ;;  %v72_v19 = vld [vmem:[#allocation2 + $0x118] sm:$0xff]  ;;  %v1307_v20 = vld [vmem:[#allocation2 + $0x30] sm:$0xff]  ;;  %v70_v23 = vld [vmem:[#allocation2 + $0x108] sm:$0xff] }
   0xc   :  { %v1309_v21 = vld [vmem:[#allocation2 + $0x38] sm:$0xff]  ;;  %v152_v24 = vadd.f32 %v72_v19, %v71_v18  ;;  %v149_v26 = vadd.f32 %v70_v23, %v69_v22  ;;  %v73_v27 = vld [vmem:[#allocation2 + $0x120] sm:$0xff]  ;;  %v74_v28 = vld [vmem:[#allocation2 + $0x128] sm:$0xff] }
   0xd   :  { %v110_v25 = vadd.f32 %v1309_v21, %v1307_v20  ;;  %v85_v29 = vld [vmem:[#allocation2 + $0x180] sm:$0xff]  ;;  %v86_v30 = vld [vmem:[#allocation2 + $0x188] sm:$0xff]  ;;  %v59_v31 = vld [vmem:[#allocation2 + $0xb0] sm:$0xff]  ;;  %v155_v33 = vadd.f32 %v74_v28, %v73_v27 }
   0xe   :  { %v60_v32 = vld [vmem:[#allocation2 + $0xb8] sm:$0xff]  ;;  %v173_v34 = vadd.f32 %v86_v30, %v85_v29  ;;  %v1313_v36 = vld [vmem:[#allocation2 + $0x40] sm:$0xff]  ;;  %v1315_v37 = vld [vmem:[#allocation2 + $0x48] sm:$0xff] }
   0xf   :  { %v134_v35 = vadd.f32 %v60_v32, %v59_v31  ;;  %v61_v38 = vld [vmem:[#allocation2 + $0xc0] sm:$0xff]  ;;  %v62_v39 = vld [vmem:[#allocation2 + $0xc8] sm:$0xff]  ;;  %v87_v40 = vld [vmem:[#allocation2 + $0x190] sm:$0xff]  ;;  %v113_v42 = vadd.f32 %v1315_v37, %v1313_v36 }
  0x10   :  { %v88_v41 = vld [vmem:[#allocation2 + $0x198] sm:$0xff]  ;;  %v137_v43 = vadd.f32 %v62_v39, %v61_v38  ;;  %v89_v45 = vld [vmem:[#allocation2 + $0x1a0] sm:$0xff]  ;;  %v90_v46 = vld [vmem:[#allocation2 + $0x1a8] sm:$0xff]  ;;  %v273_v39 = vlaneseq }
  0x11   :  { %129 = vadd.xlane.f32.xlu1 %v128_v15  ;;  %v176_v44 = vadd.f32 %v88_v41, %v87_v40  ;;  %v1319_v47 = vld [vmem:[#allocation2 + $0x50] sm:$0xff]  ;;  %v1321_v48 = vld [vmem:[#allocation2 + $0x58] sm:$0xff]  ;;  %v179_v51 = vadd.f32 %v90_v46, %v89_v45  ;;  %v77_v54 = vld [vmem:[#allocation2 + $0x140] sm:$0xff] }
  0x12   :  { %132 = vadd.xlane.f32.xlu2 %v131_v16  ;;  %v75_v49 = vld [vmem:[#allocation2 + $0x130] sm:$0xff]  ;;  %v76_v50 = vld [vmem:[#allocation2 + $0x138] sm:$0xff]  ;;  %v116_v52 = vadd.f32 %v1321_v48, %v1319_v47  ;;  %v78_v55 = vld [vmem:[#allocation2 + $0x148] sm:$0xff] }
  0x13   :  { %105 = vadd.xlane.f32.xlu0 %v104_v17  ;;  %v158_v53 = vadd.f32 %v76_v50, %v75_v49  ;;  %v91_v56 = vld [vmem:[#allocation2 + $0x1b0] sm:$0xff]  ;;  %v92_v57 = vld [vmem:[#allocation2 + $0x1b8] sm:$0xff]  ;;  %v161_v60 = vadd.f32 %v78_v55, %v77_v54  ;;  %v65_v63 = vld [vmem:[#allocation2 + $0xe0] sm:$0xff] }
  0x14   :  { %v1325_v58 = vld [vmem:[#allocation2 + $0xd0] sm:$0xff]  ;;  %v1327_v59 = vld [vmem:[#allocation2 + $0xd8] sm:$0xff]  ;;  %v182_v61 = vadd.f32 %v92_v57, %v91_v56  ;;  %v66_v0 = vld [vmem:[#allocation2 + $0xe8] sm:$0xff] }
  0x15   :  { %v140_v62 = vadd.f32 %v1327_v59, %v1325_v58  ;;  %v79_v1 = vld [vmem:[#allocation2 + $0x150] sm:$0xff]  ;;  %v80_v2 = vld [vmem:[#allocation2 + $0x158] sm:$0xff]  ;;  %v1331_v3 = vld [vmem:[#allocation2 + $0x60] sm:$0xff]  ;;  %v143_v7 = vadd.f32 %v66_v0, %v65_v63 }
  0x16   :  { %v1333_v4 = vld [vmem:[#allocation2 + $0x68] sm:$0xff]  ;;  %v164_v8 = vadd.f32 %v80_v2, %v79_v1  ;;  %v1337_v10 = vld [vmem:[#allocation2 + $0x70] sm:$0xff]  ;;  %v1339_v11 = vld [vmem:[#allocation2 + $0x78] sm:$0xff] }
  0x17   :  { %v119_v9 = vadd.f32 %v1333_v4, %v1331_v3  ;;  %v67_v12 = vld [vmem:[#allocation2 + $0xf0] sm:$0xff]  ;;  %v68_v13 = vld [vmem:[#allocation2 + $0xf8] sm:$0xff]  ;;  %v93_v14 = vld [vmem:[#allocation2 + $0x1c0] sm:$0xff]  ;;  %v122_v16 = vadd.f32 %v1339_v11, %v1337_v10 }
  0x18   :  { %v94_v15 = vld [vmem:[#allocation2 + $0x1c8] sm:$0xff]  ;;  %v146_v17 = vadd.f32 %v68_v13, %v67_v12  ;;  %v95_v19 = vld [vmem:[#allocation2 + $0x1d0] sm:$0xff]  ;;  %v96_v22 = vld [vmem:[#allocation2 + $0x1d8] sm:$0xff] }
  0x19   :  { %153 = vadd.xlane.f32.xlu1 %v152_v24  ;;  %v185_v18 = vadd.f32 %v94_v15, %v93_v14  ;;  %v81_v23 = vld [vmem:[#allocation2 + $0x160] sm:$0xff]  ;;  %v82_v24 = vld [vmem:[#allocation2 + $0x168] sm:$0xff]  ;;  %v188_v27 = vadd.f32 %v96_v22, %v95_v19  ;;  %v99_v30 = vld [vmem:[#allocation2 + $0x1f0] sm:$0xff] }
  0x1a   :  { %111 = vadd.xlane.f32.xlu2 %v110_v25  ;;  %v1343_v25 = vld [vmem:[#allocation2 + $0x170] sm:$0xff]  ;;  %v167_v28 = vadd.f32 %v82_v24, %v81_v23  ;;  %v100_v31 = vld [vmem:[#allocation2 + $0x1f8] sm:$0xff]  ;;  %v97_v32 = vld [vmem:[#allocation2 + $0x1e0] sm:$0xff] }
  0x1b   :  { %150 = vadd.xlane.f32.xlu0 %v149_v26  ;;  %v1345_v26 = vld [vmem:[#allocation2 + $0x178] sm:$0xff]  ;;  %v235_v15 = vld [vmem:[%s1682_s1 + $0x30] sm:$0xff] }
  0x1c   :  { %v170_v29 = vadd.f32 %v1345_v26, %v1343_v25  ;;  %v236_v13 = vld [vmem:[%s1682_s1 + $0x38] sm:$0xff] }
  0x1d   :  { %v1387_v14 = vand.u32 4294901760, %v236_v13 }
  0x1f   :  { %367 = vmatpush.msra.mxu0 %v1387_v14  ;;  %499 = vmatpush.msra.mxu3 %v1387_v14 }
  0x21   :  { %156 = vadd.xlane.f32.xlu1 %v155_v33  ;;  %v98_v33 = vld [vmem:[#allocation2 + $0x1e8] sm:$0xff] }
  0x22   :  { %174 = vadd.xlane.f32.xlu2 %v173_v34  ;;  %v194_v34 = vadd.f32 %v100_v31, %v99_v30 }
  0x23   :  { %135 = vadd.xlane.f32.xlu0 %v134_v35  ;;  %v191_v35 = vadd.f32 %v98_v33, %v97_v32 }
  0x29   :  { %114 = vadd.xlane.f32.xlu1 %v113_v42  ;;  %v1350_v42 = vand.u32 127, %v273_v39 }
  0x2a   :  { %138 = vadd.xlane.f32.xlu2 %v137_v43 }
  0x2b   :  { %177 = vadd.xlane.f32.xlu0 %v176_v44  ;;  %v1353_v44 = vadd.s32 4294967280, %v1350_v42  ;;  %v1356_v46 = vadd.s32 4294967288, %v1350_v42 }
  0x31   :  { %180 = vadd.xlane.f32.xlu1 %v179_v51 }
  0x32   :  { %117 = vadd.xlane.f32.xlu2 %v116_v52 }
  0x33   :  { %159 = vadd.xlane.f32.xlu0 %v158_v53 }
  0x39   :  { %162 = vadd.xlane.f32.xlu1 %v161_v60 }
  0x3a   :  { %183 = vadd.xlane.f32.xlu2 %v182_v61 }
  0x3b   :  { %141 = vadd.xlane.f32.xlu0 %v140_v62 }
  0x41   :  { %144 = vadd.xlane.f32.xlu1 %v143_v7 }
  0x42   :  { %165 = vadd.xlane.f32.xlu2 %v164_v8 }
  0x43   :  { %120 = vadd.xlane.f32.xlu0 %v119_v9 }
  0x49   :  { %123 = vadd.xlane.f32.xlu1 %v122_v16  ;;  %v1393_v16 = vsub.f32 %v236_v13, %v1387_v14 }
  0x4a   :  { %147 = vadd.xlane.f32.xlu2 %v146_v17  ;;  %v1397_v17 = vand.u32 4294901760, %v235_v15 }
  0x4b   :  { %186 = vadd.xlane.f32.xlu0 %v185_v18  ;;  %v234_v18 = vld [vmem:[%s1682_s1 + $0x28] sm:$0xff]  ;;  %v401_v22 = vand.u32 4294901760, %v1393_v16  ;;  %462 = vmatpush.msra.mxu2 %v1393_v16 }
  0x4c   :  { %v1405_v23 = vand.u32 4294901760, %v234_v18  ;;  %369 = vmatpush.msra.mxu0 %v1397_v17  ;;  %501 = vmatpush.msra.mxu3 %v1397_v17 }
  0x4d   :  { %v402_v30 = vsub.f32 %v1393_v16, %v401_v22 }
  0x4e   :  { %v1424_v31 = vsub.f32 %v234_v18, %v1405_v23  ;;  %371 = vmatpush.msra.mxu0 %v1405_v23  ;;  %503 = vmatpush.msra.mxu3 %v1405_v23  ;;  %v229_v18 = vld [vmem:[%s1682_s1] sm:$0xff] }
  0x51   :  { %189 = vadd.xlane.f32.xlu1 %v188_v27 }
  0x52   :  { %171 = vadd.xlane.f32.xlu2 %v170_v29  ;;  %v233_v29 = vld [vmem:[%s1682_s1 + $0x20] sm:$0xff] }
  0x53   :  { %168 = vadd.xlane.f32.xlu0 %v167_v28  ;;  %v1413_v28 = vsub.f32 %v235_v15, %v1397_v17  ;;  %v1427_v33 = vand.u32 4294901760, %v233_v29 }
  0x55   :  { %v407_v32 = vand.u32 4294901760, %v1413_v28  ;;  %465 = vmatpush.msra.mxu2 %v1413_v28  ;;  %373 = vmatpush.msra.mxu0 %v1427_v33 }
  0x56   :  { %505 = vmatpush.msra.mxu3 %v1427_v33 }
  0x57   :  { %468 = vmatpush.msra.mxu2 %v1424_v31 }
  0x59   :  { %195 = vadd.xlane.f32.xlu1 %v194_v34  ;;  %v232_v34 = vld [vmem:[%s1682_s1 + $0x18] sm:$0xff] }
  0x5b   :  { %192 = vadd.xlane.f32.xlu0 %v191_v35  ;;  %v403_v35 = vand.u32 4294901760, %v402_v30 }
  0x5d   :  { %404 = vmatpush.msra.mxu1 %v403_v35  ;;  %v1469_v35 = vand.u32 4294901760, %v229_v18 }
  0x7c   :  { %v127_v38 = vpop.xlane.xlu1 %126 }
  0x7d   :  { %v109_v40 = vpop.xlane.xlu2 %108  ;;  %v205_v43 = vmul.f32 0.00390625, %v127_v38  ;;  %v413_v38 = vand.u32 4294901760, %v1424_v31 }
  0x7e   :  { %v103_v41 = vpop.xlane.xlu0 %102  ;;  %v199_v45 = vmul.f32 0.00390625, %v109_v40  ;;  %v408_v40 = vsub.f32 %v1413_v28, %v407_v32 }
  0x7f   :  { %v197_v49 = vmul.f32 0.00390625, %v103_v41  ;;  %v304_v55 = vperm.slane %v205_v43, %v1350_v42  ;;  %v418_v41 = vsub.f32 %v233_v29, %v1427_v33  ;;  %v231_v43 = vld [vmem:[%s1682_s1 + $0x10] sm:$0xff] }
  0x80   :  { %v281_v56 = vperm.slane %v199_v45, %v1353_v44  ;;  %v414_v45 = vsub.f32 %v1424_v31, %v413_v38 }
  0x81   :  { %v275_v60 = vperm.slane %v197_v49, %v1350_v42  ;;  %v1446_v49 = vand.u32 4294901760, %v232_v34  ;;  %471 = vmatpush.msra.mxu2 %v418_v41 }
  0x83   :  { %375 = vmatpush.msra.mxu0 %v1446_v49  ;;  %507 = vmatpush.msra.mxu3 %v1446_v49 }
  0x84   :  { %v130_v50 = vpop.xlane.xlu1 %129 }
  0x85   :  { %v206_v51 = vmul.f32 0.00390625, %v130_v50  ;;  %v1358_v52 = vpop.xlane.xlu2 %132  ;;  %v409_v50 = vand.u32 4294901760, %v408_v40 }
  0x86   :  { %v106_v53 = vpop.xlane.xlu0 %105  ;;  %v207_v16 = vmul.f32 0.00390625, %v1358_v52 }
  0x87   :  { %v198_v54 = vmul.f32 0.00390625, %v106_v53  ;;  %v305_v57 = vperm.slane %v206_v51, %v1356_v46  ;;  %v419_v51 = vand.u32 4294901760, %v418_v41  ;;  %v1449_v53 = vand.u32 4294901760, %v231_v43  ;;  %410 = vmatpush.msra.mxu1 %v409_v50 }
  0x89   :  { %v277_v61 = vperm.slane %v198_v54, %v1356_v46  ;;  %v1366_v62 = vsel %vm278_vm0, %v305_v57, %v304_v55  ;;  %v230_v54 = vld [vmem:[%s1682_s1 + $0x8] sm:$0xff]  ;;  %v424_v57 = vsub.f32 %v232_v34, %v1446_v49  ;;  %v420_v13 = vsub.f32 %v418_v41, %v419_v51  ;;  %377 = vmatpush.msra.mxu0 %v1449_v53 }
  0x8a   :  { %v430_v15 = vsub.f32 %v231_v43, %v1449_v53  ;;  %509 = vmatpush.msra.mxu3 %v1449_v53 }
  0x8b   :  { %v279_v63 = vsel %vm278_vm0, %v277_v61, %v275_v60  ;;  %v1457_v60 = vand.u32 4294901760, %v230_v54  ;;  %v425_v29 = vand.u32 4294901760, %v424_v57  ;;  %474 = vmatpush.msra.mxu2 %v424_v57  ;;  %v421_v31 = vand.u32 4294901760, %v420_v13 }
  0x8c   :  { %v1370_v0 = vsel %vm282_vm1, %v281_v56, %v279_v63  ;;  %v1372_v1 = vpop.xlane.xlu1 %153  ;;  %v415_v56 = vand.u32 4294901760, %v414_v45  ;;  %v431_v34 = vand.u32 4294901760, %v430_v15  ;;  %v442_v45 = vsub.f32 %v229_v18, %v1469_v35 }
  0x8d   :  { %v1374_v2 = vpop.xlane.xlu2 %111  ;;  %v436_v30 = vsub.f32 %v230_v54, %v1457_v60  ;;  %v426_v40 = vsub.f32 %v424_v57, %v425_v29  ;;  %477 = vmatpush.msra.mxu2 %v430_v15  ;;  %379 = vmatpush.msra.mxu0 %v1457_v60 }
  0x8e   :  { %v1376_v7 = vpop.xlane.xlu0 %150  ;;  %416 = vmatpush.msra.mxu1 %v415_v56  ;;  %v432_v43 = vsub.f32 %v430_v15, %v431_v34  ;;  %511 = vmatpush.msra.mxu3 %v1457_v60  ;;  %v443_v13 = vand.u32 4294901760, %v442_v45 }
  0x8f   :  { %v437_v41 = vand.u32 4294901760, %v436_v30  ;;  %v427_v50 = vand.u32 4294901760, %v426_v40  ;;  %480 = vmatpush.msra.mxu2 %v436_v30  ;;  %381 = vmatpush.msra.mxu0 %v1469_v35 }
  0x90   :  { %422 = vmatpush.msra.mxu1 %v421_v31  ;;  %v433_v54 = vand.u32 4294901760, %v432_v43  ;;  %513 = vmatpush.msra.mxu3 %v1469_v35  ;;  %v444_v40 = vsub.f32 %v442_v45, %v443_v13  ;;  %v1488_v43 = vadd.s32 4294967272, %v1350_v42 }
  0x91   :  { %v438_v56 = vsub.f32 %v436_v30, %v437_v41  ;;  %532 = vmatpush.msrb.mxu0 %v401_v22  ;;  %483 = vmatpush.msra.mxu2 %v442_v45  ;;  %v200_v45 = vmul.f32 0.00390625, %v1374_v2  ;;  %v307_v2 = vperm.slane %v207_v16, %v1353_v44 }
  0x92   :  { %428 = vmatpush.msra.mxu1 %v427_v50  ;;  %v445_v30 = vand.u32 4294901760, %v444_v40 }
  0x93   :  { %v439_v31 = vand.u32 4294901760, %v438_v56  ;;  %536 = vmatpush.msrb.mxu0 %v407_v32 }
  0x94   :  { %v1378_v8 = vpop.xlane.xlu1 %156  ;;  %434 = vmatpush.msra.mxu1 %v433_v54  ;;  %v285_v54 = vperm.slane %v200_v45, %v1488_v43 }
  0x95   :  { %v1380_v9 = vpop.xlane.xlu2 %174  ;;  %540 = vmatpush.msrb.mxu0 %v413_v38  ;;  %v1496_v38 = vadd.s32 4294967264, %v1350_v42 }
  0x96   :  { %v1382_v12 = vpop.xlane.xlu0 %135  ;;  %440 = vmatpush.msra.mxu1 %v439_v31 }
  0x97   :  { %544 = vmatpush.msrb.mxu0 %v419_v51  ;;  %v208_v32 = vmul.f32 0.00390625, %v1382_v12  ;;  %v1501_v51 = vadd.s32 4294967256, %v1350_v42 }
  0x98   :  { %446 = vmatpush.msra.mxu1 %v445_v30  ;;  %v287_v30 = vsel %vm286_vm2, %v285_v54, %v1370_v0 }
  0x99   :  { %548 = vmatpush.msrb.mxu0 %v425_v29 }
  0x9a   :  { %575 = vmatpush.msrb.mxu1 %v1387_v14 }
  0x9b   :  { %552 = vmatpush.msrb.mxu0 %v431_v34  ;;  %v1506_v34 = vadd.s32 4294967248, %v1350_v42 }
  0x9c   :  { %v1402_v19 = vpop.xlane.xlu1 %114  ;;  %577 = vmatpush.msrb.mxu1 %v1397_v17 }
  0x9d   :  { %v1408_v24 = vpop.xlane.xlu2 %138  ;;  %v201_v14 = vmul.f32 0.00390625, %v1402_v19  ;;  %556 = vmatpush.msrb.mxu0 %v437_v41  ;;  %v309_v19 = vperm.slane %v208_v32, %v1488_v43  ;;  %v1515_v41 = vadd.s32 4294967240, %v1350_v42  ;;  %v213_v32 = vmul.f32 0.00390625, %v1376_v7 }
  0x9e   :  { %v1410_v27 = vpop.xlane.xlu0 %177  ;;  %v209_v52 = vmul.f32 0.00390625, %v1408_v24  ;;  %579 = vmatpush.msrb.mxu1 %v1405_v23 }
  0x9f   :  { %560 = vmatpush.msrb.mxu0 %v443_v13  ;;  %v289_v23 = vperm.slane %v201_v14, %v1496_v38  ;;  %v214_v13 = vmul.f32 0.00390625, %v1372_v1 }
  0xa0   :  { %581 = vmatpush.msrb.mxu1 %v1427_v33  ;;  %v311_v24 = vperm.slane %v209_v52, %v1496_v38  ;;  %v308_v33 = vsel %vm282_vm1, %v307_v2, %v1366_v62 }
  0xa1   :  { %v310_v62 = vsel %vm286_vm2, %v309_v19, %v308_v33  ;;  %v291_v1 = vsel %vm290_vm3, %v289_v23, %v287_v30  ;;  %v319_v19 = vperm.slane %v213_v32, %v1350_v42 }
  0xa2   :  { %583 = vmatpush.msrb.mxu1 %v1446_v49  ;;  %v312_v14 = vsel %vm290_vm3, %v311_v24, %v310_v62 }
  0xa4   :  { %v1454_v55 = vpop.xlane.xlu1 %180  ;;  %585 = vmatpush.msrb.mxu1 %v1449_v53 }
  0xa5   :  { %v118_v61 = vpop.xlane.xlu2 %117 }
  0xa6   :  { %v1461_v63 = vpop.xlane.xlu0 %159  ;;  %v202_v29 = vmul.f32 0.00390625, %v118_v61  ;;  %587 = vmatpush.msrb.mxu1 %v1457_v60  ;;  %v320_v60 = vperm.slane %v214_v13, %v1356_v46 }
  0xa7   :  { %v216_v54 = vmul.f32 0.00390625, %v1461_v63 }
  0xa8   :  { %v293_v61 = vperm.slane %v202_v29, %v1501_v51  ;;  %589 = vmatpush.msrb.mxu1 %v1469_v35  ;;  %v222_v35 = vmul.f32 0.00390625, %v1410_v27 }
  0xa9   :  { %v324_v13 = vperm.slane %v216_v54, %v1488_v43 }
  0xaa   :  { %v295_v0 = vsel %vm294_vm4, %v293_v61, %v291_v1  ;;  %v221_v61 = vmul.f32 0.00390625, %v1380_v9  ;;  %v335_v1 = vperm.slane %v222_v35, %v1356_v46 }
  0xac   :  { %v1479_v57 = vpop.xlane.xlu1 %162 }
  0xad   :  { %v1481_v15 = vpop.xlane.xlu2 %183  ;;  %v217_v23 = vmul.f32 0.00390625, %v1479_v57 }
  0xae   :  { %v142_v18 = vpop.xlane.xlu0 %141  ;;  %v224_v9 = vmul.f32 0.00390625, %v1481_v15 }
  0xaf   :  { %v210_v17 = vmul.f32 0.00390625, %v142_v18  ;;  %v326_v57 = vperm.slane %v217_v23, %v1496_v38 }
  0xb0   :  { %v339_v15 = vperm.slane %v224_v9, %v1488_v43  ;;  %v1155_v9 = vld [vmem:[%s1683_s2] ss:$0 sm:$0xff] }
  0xb1   :  { %v313_v18 = vperm.slane %v210_v17, %v1501_v51  ;;  %v215_v17 = vmul.f32 0.00390625, %v1378_v8 }
  0xb3   :  { %v314_v29 = vsel %vm294_vm4, %v313_v18, %v312_v14  ;;  %v322_v18 = vperm.slane %v215_v17, %v1353_v44 }
  0xb4   :  { %v145_v22 = vpop.xlane.xlu1 %144 }
  0xb5   :  { %v1491_v50 = vpop.xlane.xlu2 %165  ;;  %v211_v56 = vmul.f32 0.00390625, %v145_v22 }
  0xb6   :  { %v121_v28 = vpop.xlane.xlu0 %120  ;;  %v218_v8 = vmul.f32 0.00390625, %v1491_v50  ;;  %v334_v50 = vperm.slane %v221_v61, %v1350_v42 }
  0xb7   :  { %v203_v12 = vmul.f32 0.00390625, %v121_v28  ;;  %v315_v16 = vperm.slane %v211_v56, %v1506_v34 }
  0xb8   :  { %v336_v46 = vsel %vm278_vm0, %v335_v1, %v334_v50 }
  0xb9   :  { %v297_v31 = vperm.slane %v203_v12, %v1506_v34  ;;  %v316_v12 = vsel %vm298_vm5, %v315_v16, %v314_v29  ;;  %v321_v16 = vsel %vm278_vm0, %v320_v60, %v319_v19 }
  0xba   :  { %v323_v27 = vsel %vm282_vm1, %v322_v18, %v321_v16 }
  0xbb   :  { %v299_v53 = vsel %vm298_vm5, %v297_v31, %v295_v0  ;;  %v325_v14 = vsel %vm286_vm2, %v324_v13, %v323_v27 }
  0xbc   :  { %v124_v40 = vpop.xlane.xlu1 %123  ;;  %v327_v0 = vsel %vm290_vm3, %v326_v57, %v325_v14 }
  0xbd   :  { %v204_v22 = vmul.f32 0.00390625, %v124_v40  ;;  %v148_v45 = vpop.xlane.xlu2 %147  ;;  %v223_v40 = vmul.f32 0.00390625, %v1454_v55 }
  0xbe   :  { %v187_v28 = vpop.xlane.xlu0 %186  ;;  %v212_v49 = vmul.f32 0.00390625, %v148_v45 }
  0xbf   :  { %v301_v52 = vperm.slane %v204_v22, %v1515_v41  ;;  %v328_v22 = vperm.slane %v218_v8, %v1501_v51  ;;  %v225_v45 = vmul.f32 0.00390625, %v187_v28  ;;  %v337_v32 = vperm.slane %v223_v40, %v1353_v44 }
  0xc0   :  { %v317_v2 = vperm.slane %v212_v49, %v1515_v41 }
  0xc1   :  { %v303_v7 = vsel %vm302_vm6, %v301_v52, %v299_v53  ;;  %v329_v42 = vsel %vm294_vm4, %v328_v22, %v327_v0  ;;  %v341_v28 = vperm.slane %v225_v45, %v1496_v38 }
  0xc2   :  { %v318_v56 = vsel %vm302_vm6, %v317_v2, %v316_v12  ;;  %v338_v12 = vsel %vm282_vm1, %v337_v32, %v336_v46 }
  0xc3   :  { %v350_v24 = vsel %vm349_vm7, %v318_v56, %v303_v7  ;;  %v340_v43 = vsel %vm286_vm2, %v339_v15, %v338_v12 }
  0xc4   :  { %v190_v33 = vpop.xlane.xlu1 %189  ;;  %v342_v38 = vsel %vm290_vm3, %v341_v28, %v340_v43  ;;  %v1589_v43 = vshrl.u32 %v273_v39, 7 }
  0xc5   :  { %v172_v63 = vpop.xlane.xlu2 %171  ;;  %v226_v55 = vmul.f32 0.00390625, %v190_v33 }
  0xc6   :  { %v169_v31 = vpop.xlane.xlu0 %168  ;;  %v220_v62 = vmul.f32 0.00390625, %v172_v63  ;;  %1122 = vset.pattern.permute.xlu2 %v1589_v43 }
  0xc7   :  { %v219_v30 = vmul.f32 0.00390625, %v169_v31  ;;  %v343_v53 = vperm.slane %v226_v55, %v1501_v51 }
  0xc8   :  { %v332_v52 = vperm.slane %v220_v62, %v1515_v41 }
  0xc9   :  { %v330_v49 = vperm.slane %v219_v30, %v1506_v34  ;;  %v344_v51 = vsel %vm294_vm4, %v343_v53, %v342_v38  ;;  %v1596_v38 = vadd.s32 8, %v1589_v43 }
  0xcb   :  { %v331_v2 = vsel %vm298_vm5, %v330_v49, %v329_v42  ;;  %1123 = vset.pattern.permute.xlu0 %v1596_v38 }
  0xcc   :  { %v196_v29 = vpop.xlane.xlu1 %195  ;;  %v333_v56 = vsel %vm302_vm6, %v332_v52, %v331_v2 }
  0xcd   :  { %v228_v17 = vmul.f32 0.00390625, %v196_v29  ;;  %v352_v23 = vsel %vm351_vm8, %v333_v56, %v350_v24 }
  0xce   :  { %v193_v44 = vpop.xlane.xlu0 %192 }
  0xcf   :  { %v227_v7 = vmul.f32 0.00390625, %v193_v44  ;;  %v347_v54 = vperm.slane %v228_v17, %v1515_v41  ;;  %v1156_v44 = vld [vmem:[%s1685_s4] ss:$0 sm:$0xff]  ;;  %s1264_s4 = smov [#allocation5]  }
  0xd0   :  { %s1102_s18 = sshll.u32 %s1264_s4, 4  ;;  %s1103_s18 = int_to_ptr.vmem [resolvable:$true] %s1102_s18 }
  0xd1   :  { %v345_v60 = vperm.slane %v227_v7, %v1506_v34  ;;  %v596_v34 = vld [vmem:[%s1684_s3] sm:$0xf] }
  0xd2   :  { %v607_v24 = vsel %vm605_vm11, %v596_v34, 0 }
  0xd3   :  { %v346_v19 = vsel %vm298_vm5, %v345_v60, %v344_v51  ;;  %v624_v40 = vand.u32 4294901760, %v607_v24 }
  0xd4   :  { %v348_v61 = vsel %vm302_vm6, %v347_v54, %v346_v19  ;;  %v1593_v54 = vadd.s32 16, %v1589_v43 }
  0xd5   :  { %v354_v8 = vsel %vm353_vm9, %v348_v61, %v352_v23  ;;  %v651_v13 = vsub.f32 %v607_v24, %v624_v40  ;;  %625 = vmatpush.msrb.mxu2 %v624_v40 }
  0xd6   :  { %v356_v33 = vsel %vm355_vm10, %v354_v8, 0  ;;  %1124 = vset.pattern.permute.xlu1 %v1593_v54 }
  0xd7   :  { %v382_v18 = vand.u32 4294901760, %v356_v33  ;;  %v652_v30 = vand.u32 4294901760, %v651_v13 }
  0xd9   :  { %448 = vmatmul.f32.vlgmr.msra.gmra.mxu1 %v382_v18  ;;  %v383_v41 = vsub.f32 %v356_v33, %v382_v18  ;;  %v653_v16 = vsub.f32 %v651_v13, %v652_v30 }
  0xda   :  { %749 = vmatpush.msra.mxu1 %v624_v40 }
  0xdb   :  { %486 = vmatmul.f32.vlgmr.msra.gmra.mxu2 %v383_v41  ;;  %v384_v35 = vand.u32 4294901760, %v383_v41  ;;  %v654_v57 = vand.u32 4294901760, %v653_v16 }
  0xdc   :  { %678 = vmatpush.msra.mxu2 %v651_v13 }
  0xdd   :  { %517 = vmatmul.f32.vlgmr.msra.gmra.mxu3 %v384_v35  ;;  %v385_v31 = vsub.f32 %v383_v41, %v384_v35 }
  0xde   :  { %655 = vmatpush.msrb.mxu3 %v654_v57 }
  0xdf   :  { %v386_v63 = vand.u32 4294901760, %v385_v31 }
  0xe0   :  { %701 = vmatpush.msra.mxu3 %v624_v40 }
  0xe1   :  { %387 = vmatmul.f32.vlgmr.msra.gmra.mxu0 %v386_v63  ;;  %591 = vmatmul.f32.vlgmr.msrb.gmra.mxu1 %v382_v18 }
  0xe2   :  { %727 = vmatpush.msra.mxu0 %v652_v30 }
  0xe9   :  { %562 = vmatmul.f32.vlgmr.msrb.gmra.mxu0 %v382_v18 }
 0x156   :  { %v449_v50 = vpop.f32.mrf.mxu1 }
 0x15e   :  { %v388_v22 = vpop.f32.mrf.mxu0  ;;  %v487_v27 = vpop.f32.mrf.mxu2 }
 0x15f   :  { %v389_v45 = vadd.f32 %v1155_v9, %v388_v22  ;;  %v592_v0 = vpop.f32.mrf.mxu1  ;;  %v1601_v22 = vadd.s32 40, %v1589_v43 }
 0x160   :  { %v518_v55 = vpop.f32.mrf.mxu3 }
 0x161   :  { %v450_v62 = vadd.f32 %v449_v50, %v389_v45  ;;  %v1604_v45 = vadd.s32 24, %v1589_v43 }
 0x163   :  { %v488_v1 = vadd.f32 %v487_v27, %v450_v62  ;;  %v1610_v27 = vadd.s32 56, %v1589_v43 }
 0x165   :  { %v519_v49 = vadd.f32 %v518_v55, %v488_v1  ;;  %v801_v1 = vadd.s32 32, %v1589_v43  ;;  %v1616_v55 = vadd.s32 48, %v1589_v43 }
 0x166   :  { %v563_v32 = vpop.f32.mrf.mxu0 }
 0x167   :  { %v564_v14 = vadd.f32 %v563_v32, %v519_v49 }
 0x169   :  { %v593_v15 = vadd.f32 %v592_v0, %v564_v14 }
 0x16b   :  { %v595_v42 = vmax.f32 %v593_v15, 0.0 }
 0x16d   :  { %v603_v28 = vsel %vm601_vm12, %v595_v42, 0 }
 0x16e   :  { %v626_v52 = vand.u32 4294901760, %v603_v28 }
 0x170   :  { %v627_v29 = vsub.f32 %v603_v28, %v626_v52  ;;  %657 = vmatmul.f32.vlgmr.msrb.gmra.mxu3 %v626_v52  ;;  %729 = vmatmul.f32.vlgmr.msra.gmra.mxu0 %v626_v52 }
 0x171   :  { %751 = vmatmul.f32.vlgmr.msra.gmra.mxu1 %v626_v52 }
 0x172   :  { %v628_v46 = vand.u32 4294901760, %v627_v29 }
 0x174   :  { %v629_v53 = vsub.f32 %v627_v29, %v628_v46 }
 0x176   :  { %v630_v2 = vand.u32 4294901760, %v629_v53  ;;  %v1162_v53 = vld [vmem:[#allocation2 + $0x28] sm:$0xff] }
 0x178   :  { %631 = vmatmul.f32.vlgmr.msrb.gmra.mxu2 %v630_v2  ;;  %705 = vmatmul.f32.vlgmr.msra.gmra.mxu3 %v628_v46 }
 0x180   :  { %681 = vmatmul.f32.vlgmr.msra.gmra.mxu2 %v627_v29  ;;  %v1161_v29 = vld [vmem:[#allocation2 + $0x20] sm:$0xff] }
 0x1ed   :  { %v730_v61 = vpop.f32.mrf.mxu0 }
 0x1ee   :  { %v752_v8 = vpop.f32.mrf.mxu1 }
 0x1f3   :  { %v658_v17 = vpop.f32.mrf.mxu3 }
 0x1fb   :  { %v632_v12 = vpop.f32.mrf.mxu2  ;;  %v706_v19 = vpop.f32.mrf.mxu3 }
 0x1fc   :  { %v633_v7 = vadd.f32 %v1156_v44, %v632_v12  ;;  %v1163_v44 = vld [vmem:[#allocation2 + $0x10] sm:$0xff]  ;;  %v1164_v12 = vld [vmem:[#allocation2 + $0x18] sm:$0xff] }
 0x1fe   :  { %v659_v56 = vadd.f32 %v658_v17, %v633_v7 }
 0x203   :  { %v682_v60 = vpop.f32.mrf.mxu2 }
 0x204   :  { %v683_v51 = vadd.f32 %v682_v60, %v659_v56 }
 0x206   :  { %v707_v23 = vadd.f32 %v706_v19, %v683_v51 }
 0x208   :  { %v731_v39 = vadd.f32 %v730_v61, %v707_v23  ;;  %v1165_v61 = vld [vmem:[#allocation2 + $0x80] sm:$0xff] }
 0x20a   :  { %v753_v33 = vadd.f32 %v752_v8, %v731_v39  ;;  %v1166_v8 = vld [vmem:[#allocation2 + $0x88] sm:$0xff] }
 0x20c   :  { %v1117_v18 = vmul.f32 -1.442695, %v753_v33 }
 0x20e   :  { %1157 = vpow2.f32 %v1117_v18 }
 0x214   :  { %v1158_v41 = vpop.eup %1157 }
 0x215   :  { %v758_v35 = vadd.f32 1.0, %v1158_v41 }
 0x217   :  { %1159 = vrcp.f32 %v758_v35  ;;  %v770_v24 = vand.u32 2147483648, %v758_v35  ;;  %v768_v13 = vand.u32 2147483647, %v758_v35  ;;  %vm764_vm14 = vweird.f32 %v758_v35 }
 0x219   :  { %v771_v16 = vor.u32 1.1754944e-38, %v770_v24  ;;  %vm769_vm0 = vcmp.eq.f32.partialorder %v768_v13, 8.507059e+37 }
 0x21d   :  { %v1160_v31 = vpop.eup %1159 }
 0x21e   :  { %v760_v63 = vmul.f32 %v1160_v31, %v758_v35  ;;  %vm765_vm13 = vweird.f32 %v1160_v31 }
 0x21f   :  { %vm766_vm15 = vmor %vm764_vm14, %vm765_vm13 }
 0x220   :  { %v761_v34 = vsub.f32 1.0, %v760_v63 }
 0x222   :  { %v762_v40 = vmul.f32 %v1160_v31, %v761_v34  ;;  %v1168_v34 = vld [vmem:[#allocation2 + $0x98] sm:$0xff] }
 0x224   :  { %v763_v30 = vadd.f32 %v1160_v31, %v762_v40  ;;  %v1170_v40 = vld [vmem:[#allocation2 + $0xa8] sm:$0xff] }
 0x226   :  { %v767_v57 = vsel %vm766_vm15, %v1160_v31, %v763_v30  ;;  %v1171_v30 = vld [vmem:[#allocation2 + $0x120] sm:$0xff] }
 0x227   :  { %v772_v9 = vsel %vm769_vm0, %v771_v16, %v767_v57 }
 0x228   :  { %v774_v50 = vperm.slane %v772_v9, 0  ;;  %v823_v62 = vperm.slane %v772_v9, 1  ;;  %v1621_v49 = vperm.slane %v772_v9, 2  ;;  %v1629_v32 = vperm.slane %v772_v9, 3 }
 0x22a   :  { %791 = vperm.xlu1 %1124, %v774_v50   ;;  %785 = vperm.xlu0 %1123, %v774_v50  }
 0x22b   :  { %779 = vperm.xlu2 %1122, %v774_v50  }
 0x232   :  { %1127 = vset.pattern.permute.xlu1 %v1601_v22  ;;  %1130 = vset.pattern.permute.xlu0 %v1589_v43 }
 0x233   :  { %1125 = vset.pattern.permute.xlu2 %v1604_v45 }
 0x23a   :  { %809 = vperm.xlu1 %1127, %v774_v50   ;;  %828 = vperm.xlu0 %1130, %v823_v62  }
 0x23b   :  { %797 = vperm.xlu2 %1125, %v774_v50  }
 0x242   :  { %1129 = vset.pattern.permute.xlu1 %v1610_v27  ;;  %1135 = vset.pattern.permute.xlu0 %v1601_v22 }
 0x243   :  { %1126 = vset.pattern.permute.xlu2 %v801_v1 }
 0x24a   :  { %821 = vperm.xlu1 %1129, %v774_v50   ;;  %858 = vperm.xlu0 %1135, %v823_v62  }
 0x24b   :  { %803 = vperm.xlu2 %1126, %v774_v50  }
 0x252   :  { %1132 = vset.pattern.permute.xlu1 %v1593_v54  ;;  %1140 = vset.pattern.permute.xlu0 %v1593_v54 }
 0x253   :  { %1128 = vset.pattern.permute.xlu2 %v1616_v55 }
 0x25a   :  { %840 = vperm.xlu1 %1132, %v823_v62   ;;  %889 = vperm.xlu0 %1140, %v1621_v49  }
 0x25b   :  { %815 = vperm.xlu2 %1128, %v774_v50   ;;  %v1173_v50 = vld [vmem:[#allocation2 + $0xb0] sm:$0xff] }
 0x262   :  { %1134 = vset.pattern.permute.xlu1 %v801_v1  ;;  %1145 = vset.pattern.permute.xlu0 %v1610_v27 }
 0x263   :  { %1131 = vset.pattern.permute.xlu2 %v1596_v38 }
 0x26a   :  { %852 = vperm.xlu1 %1134, %v823_v62   ;;  %919 = vperm.xlu0 %1145, %v1621_v49  }
 0x26b   :  { %834 = vperm.xlu2 %1131, %v823_v62  }
 0x272   :  { %1137 = vset.pattern.permute.xlu1 %v1610_v27  ;;  %1150 = vset.pattern.permute.xlu0 %v801_v1 }
 0x273   :  { %1133 = vset.pattern.permute.xlu2 %v1604_v45 }
 0x27a   :  { %870 = vperm.xlu1 %1137, %v823_v62   ;;  %950 = vperm.xlu0 %1150, %v1629_v32  }
 0x27b   :  { %846 = vperm.xlu2 %1133, %v823_v62  }
 0x282   :  { %1139 = vset.pattern.permute.xlu1 %v1596_v38  ;;  %1154 = vset.pattern.permute.xlu0 %v1610_v27 }
 0x283   :  { %1136 = vset.pattern.permute.xlu2 %v1616_v55 }
 0x285   :  { %v780_v14 = vpop.permute.xlu2 %779 }
 0x286   :  { %v970_v0 = vmul.f32 %v780_v14, %v1301_v5  ;;  %v971_v15 = vmul.f32 %v780_v14, %v1303_v6 }
 0x288   :  { %1034 = vst [vmem:[#allocation5] sm:$0xff] %v970_v0  ;;  %v1175_v0 = vld [vmem:[#allocation2 + $0xc0] sm:$0xff] }
 0x289   :  { %1035 = vst [vmem:[#allocation5 + $0x8] sm:$0xff] %v971_v15 }
 0x28a   :  { %883 = vperm.xlu1 %1139, %v1621_v49  }
 0x28b   :  { %864 = vperm.xlu2 %1136, %v823_v62   ;;  %v1174_v62 = vld [vmem:[#allocation2 + $0xb8] sm:$0xff] }
 0x292   :  { %1142 = vset.pattern.permute.xlu1 %v801_v1 }
 0x293   :  { %1138 = vset.pattern.permute.xlu2 %v1589_v43 }
 0x295   :  { %v798_v42 = vpop.permute.xlu2 %797 }
 0x296   :  { %v976_v28 = vmul.f32 %v798_v42, %v1307_v20  ;;  %v977_v52 = vmul.f32 %v798_v42, %v1309_v21  ;;  %v1176_v42 = vld [vmem:[#allocation2 + $0xc8] sm:$0xff] }
 0x298   :  { %1040 = vst [vmem:[#allocation5 + $0x30] sm:$0xff] %v976_v28 }
 0x299   :  { %1041 = vst [vmem:[#allocation5 + $0x38] sm:$0xff] %v977_v52 }
 0x29a   :  { %901 = vperm.xlu1 %1142, %v1621_v49  }
 0x29b   :  { %877 = vperm.xlu2 %1138, %v1621_v49  }
 0x29c   :  { %v792_v5 = vpop.permute.xlu1 %791  ;;  %v786_v6 = vpop.permute.xlu0 %785 }
 0x29d   :  { %v974_v46 = vmul.f32 %v1161_v29, %v792_v5  ;;  %v975_v2 = vmul.f32 %v1162_v53, %v792_v5  ;;  %v972_v17 = vmul.f32 %v1163_v44, %v786_v6  ;;  %v973_v7 = vmul.f32 %v1164_v12, %v786_v6  ;;  %v1177_v5 = vld [vmem:[#allocation2 + $0xe0] sm:$0xff]  ;;  %v1178_v29 = vld [vmem:[#allocation2 + $0xe8] sm:$0xff] }
 0x29e   :  { %v1181_v12 = vld [vmem:[#allocation2 + $0x1c0] sm:$0xff] }
 0x29f   :  { %1038 = vst [vmem:[#allocation5 + $0x20] sm:$0xff] %v974_v46 }
 0x2a0   :  { %1039 = vst [vmem:[#allocation5 + $0x28] sm:$0xff] %v975_v2 }
 0x2a1   :  { %1036 = vst [vmem:[#allocation5 + $0x10] sm:$0xff] %v972_v17 }
 0x2a2   :  { %1037 = vst [vmem:[#allocation5 + $0x18] sm:$0xff] %v973_v7  ;;  %1144 = vset.pattern.permute.xlu1 %v1616_v55 }
 0x2a3   :  { %1141 = vset.pattern.permute.xlu2 %v1604_v45 }
 0x2a5   :  { %v804_v20 = vpop.permute.xlu2 %803 }
 0x2a6   :  { %v978_v21 = vmul.f32 %v804_v20, %v1313_v36  ;;  %v979_v56 = vmul.f32 %v804_v20, %v1315_v37  ;;  %v1182_v20 = vld [vmem:[#allocation2 + $0x1c8] sm:$0xff] }
 0x2a8   :  { %1042 = vst [vmem:[#allocation5 + $0x40] sm:$0xff] %v978_v21 }
 0x2a9   :  { %1043 = vst [vmem:[#allocation5 + $0x48] sm:$0xff] %v979_v56  ;;  %v1183_v56 = vld [vmem:[#allocation2 + $0x100] sm:$0xff] }
 0x2aa   :  { %913 = vperm.xlu1 %1144, %v1621_v49  }
 0x2ab   :  { %895 = vperm.xlu2 %1141, %v1621_v49  }
 0x2ac   :  { %v810_v60 = vpop.permute.xlu1 %809  ;;  %v829_v51 = vpop.permute.xlu0 %828 }
 0x2ad   :  { %v980_v19 = vmul.f32 %v810_v60, %v1319_v47  ;;  %v981_v23 = vmul.f32 %v810_v60, %v1321_v48  ;;  %v986_v39 = vmul.f32 %v1165_v61, %v829_v51  ;;  %v987_v33 = vmul.f32 %v1166_v8, %v829_v51  ;;  %v1184_v51 = vld [vmem:[#allocation2 + $0x108] sm:$0xff]  ;;  %v1185_v61 = vld [vmem:[#allocation2 + $0x110] sm:$0xff]  ;;  %v1186_v8 = vld [vmem:[#allocation2 + $0x118] sm:$0xff] }
 0x2af   :  { %1044 = vst [vmem:[#allocation5 + $0x50] sm:$0xff] %v980_v19 }
 0x2b0   :  { %1045 = vst [vmem:[#allocation5 + $0x58] sm:$0xff] %v981_v23 }
 0x2b1   :  { %1050 = vst [vmem:[#allocation5 + $0x80] sm:$0xff] %v986_v39 }
 0x2b2   :  { %1051 = vst [vmem:[#allocation5 + $0x88] sm:$0xff] %v987_v33  ;;  %1147 = vset.pattern.permute.xlu1 %v1596_v38 }
 0x2b3   :  { %1143 = vset.pattern.permute.xlu2 %v1601_v22 }
 0x2b5   :  { %v816_v36 = vpop.permute.xlu2 %815 }
 0x2b6   :  { %v982_v37 = vmul.f32 %v816_v36, %v1331_v3  ;;  %v983_v18 = vmul.f32 %v816_v36, %v1333_v4  ;;  %v1167_v4 = vld [vmem:[#allocation2 + $0x90] sm:$0xff] }
 0x2b8   :  { %1046 = vst [vmem:[#allocation5 + $0x60] sm:$0xff] %v982_v37  ;;  %v1187_v37 = vld [vmem:[#allocation2 + $0x130] sm:$0xff] }
 0x2b9   :  { %1047 = vst [vmem:[#allocation5 + $0x68] sm:$0xff] %v983_v18 }
 0x2ba   :  { %932 = vperm.xlu1 %1147, %v1629_v32  }
 0x2bb   :  { %907 = vperm.xlu2 %1143, %v1621_v49  }
 0x2bc   :  { %v822_v47 = vpop.permute.xlu1 %821  ;;  %v859_v48 = vpop.permute.xlu0 %858 }
 0x2bd   :  { %v984_v41 = vmul.f32 %v822_v47, %v1337_v10  ;;  %v985_v35 = vmul.f32 %v822_v47, %v1339_v11  ;;  %v996_v38 = vmul.f32 %v859_v48, %v1325_v58  ;;  %v997_v31 = vmul.f32 %v859_v48, %v1327_v59  ;;  %v1169_v10 = vld [vmem:[#allocation2 + $0xa0] sm:$0xff] }
 0x2bf   :  { %1048 = vst [vmem:[#allocation5 + $0x70] sm:$0xff] %v984_v41  ;;  %v1189_v41 = vld [vmem:[#allocation2 + $0x140] sm:$0xff] }
 0x2c0   :  { %1049 = vst [vmem:[#allocation5 + $0x78] sm:$0xff] %v985_v35 }
 0x2c1   :  { %1060 = vst [vmem:[#allocation5 + $0xd0] sm:$0xff] %v996_v38  ;;  %v1190_v38 = vld [vmem:[#allocation2 + $0x148] sm:$0xff] }
 0x2c2   :  { %1061 = vst [vmem:[#allocation5 + $0xd8] sm:$0xff] %v997_v31  ;;  %1149 = vset.pattern.permute.xlu1 %v1604_v45 }
 0x2c3   :  { %1146 = vset.pattern.permute.xlu2 %v1589_v43  ;;  %v1172_v43 = vld [vmem:[#allocation2 + $0x128] sm:$0xff] }
 0x2c5   :  { %v835_v3 = vpop.permute.xlu2 %834 }
 0x2c6   :  { %v988_v63 = vmul.f32 %v1167_v4, %v835_v3  ;;  %v989_v24 = vmul.f32 %v1168_v34, %v835_v3  ;;  %v1191_v3 = vld [vmem:[#allocation2 + $0x150] sm:$0xff] }
 0x2c8   :  { %1052 = vst [vmem:[#allocation5 + $0x90] sm:$0xff] %v988_v63  ;;  %v1192_v63 = vld [vmem:[#allocation2 + $0x158] sm:$0xff] }
 0x2c9   :  { %1053 = vst [vmem:[#allocation5 + $0x98] sm:$0xff] %v989_v24 }
 0x2ca   :  { %944 = vperm.xlu1 %1149, %v1629_v32  }
 0x2cb   :  { %926 = vperm.xlu2 %1146, %v1629_v32  }
 0x2cc   :  { %v841_v58 = vpop.permute.xlu1 %840  ;;  %v890_v59 = vpop.permute.xlu0 %889 }
 0x2cd   :  { %v990_v11 = vmul.f32 %v1169_v10, %v841_v58  ;;  %v991_v13 = vmul.f32 %v1170_v40, %v841_v58  ;;  %v1006_v16 = vmul.f32 %v1171_v30, %v890_v59  ;;  %v1007_v57 = vmul.f32 %v1172_v43, %v890_v59  ;;  %v1193_v58 = vld [vmem:[#allocation2 + $0x160] sm:$0xff]  ;;  %v1194_v10 = vld [vmem:[#allocation2 + $0x168] sm:$0xff] }
 0x2cf   :  { %1054 = vst [vmem:[#allocation5 + $0xa0] sm:$0xff] %v990_v11 }
 0x2d0   :  { %1055 = vst [vmem:[#allocation5 + $0xa8] sm:$0xff] %v991_v13  ;;  %v1195_v13 = vld [vmem:[#allocation2 + $0x180] sm:$0xff] }
 0x2d1   :  { %1070 = vst [vmem:[#allocation5 + $0x120] sm:$0xff] %v1006_v16  ;;  %v1196_v16 = vld [vmem:[#allocation2 + $0x188] sm:$0xff] }
 0x2d2   :  { %1071 = vst [vmem:[#allocation5 + $0x128] sm:$0xff] %v1007_v57  ;;  %1152 = vset.pattern.permute.xlu1 %v1616_v55 }
 0x2d3   :  { %1148 = vset.pattern.permute.xlu2 %v1593_v54 }
 0x2d5   :  { %v847_v9 = vpop.permute.xlu2 %846 }
 0x2d6   :  { %v992_v45 = vmul.f32 %v1173_v50, %v847_v9  ;;  %v993_v1 = vmul.f32 %v1174_v62, %v847_v9  ;;  %v1197_v9 = vld [vmem:[#allocation2 + $0x190] sm:$0xff] }
 0x2d8   :  { %1056 = vst [vmem:[#allocation5 + $0xb0] sm:$0xff] %v992_v45  ;;  %v1198_v45 = vld [vmem:[#allocation2 + $0x198] sm:$0xff] }
 0x2d9   :  { %1057 = vst [vmem:[#allocation5 + $0xb8] sm:$0xff] %v993_v1 }
 0x2da   :  { %962 = vperm.xlu1 %1152, %v1629_v32  }
 0x2db   :  { %938 = vperm.xlu2 %1148, %v1629_v32  }
 0x2dc   :  { %v853_v49 = vpop.permute.xlu1 %852  ;;  %v920_v14 = vpop.permute.xlu0 %919 }
 0x2dd   :  { %v994_v15 = vmul.f32 %v1175_v0, %v853_v49  ;;  %v995_v28 = vmul.f32 %v1176_v42, %v853_v49  ;;  %v1016_v55 = vmul.f32 %v920_v14, %v1343_v25  ;;  %v1017_v54 = vmul.f32 %v920_v14, %v1345_v26  ;;  %v1179_v25 = vld [vmem:[#allocation2 + $0xf0] sm:$0xff]  ;;  %v1180_v26 = vld [vmem:[#allocation2 + $0xf8] sm:$0xff]  ;;  %v1199_v49 = vld [vmem:[#allocation2 + $0x1a0] sm:$0xff] }
 0x2de   :  { %v1200_v0 = vld [vmem:[#allocation2 + $0x1a8] sm:$0xff] }
 0x2df   :  { %1058 = vst [vmem:[#allocation5 + $0xc0] sm:$0xff] %v994_v15 }
 0x2e0   :  { %1059 = vst [vmem:[#allocation5 + $0xc8] sm:$0xff] %v995_v28  ;;  %v1201_v28 = vld [vmem:[#allocation2 + $0x1b0] sm:$0xff] }
 0x2e1   :  { %1080 = vst [vmem:[#allocation5 + $0x170] sm:$0xff] %v1016_v55 }
 0x2e2   :  { %1081 = vst [vmem:[#allocation5 + $0x178] sm:$0xff] %v1017_v54  ;;  %v1202_v54 = vld [vmem:[#allocation2 + $0x1b8] sm:$0xff] }
 0x2e3   :  { %1151 = vset.pattern.permute.xlu2 %v1601_v22 }
 0x2e5   :  { %v865_v52 = vpop.permute.xlu2 %864 }
 0x2e6   :  { %v998_v6 = vmul.f32 %v1177_v5, %v865_v52  ;;  %v999_v46 = vmul.f32 %v1178_v29, %v865_v52 }
 0x2e8   :  { %1062 = vst [vmem:[#allocation5 + $0xe0] sm:$0xff] %v998_v6  ;;  %v1203_v6 = vld [vmem:[#allocation2 + $0x1d0] sm:$0xff] }
 0x2e9   :  { %1063 = vst [vmem:[#allocation5 + $0xe8] sm:$0xff] %v999_v46  ;;  %v1204_v46 = vld [vmem:[#allocation2 + $0x1d8] sm:$0xff] }
 0x2eb   :  { %956 = vperm.xlu2 %1151, %v1629_v32  }
 0x2ec   :  { %v871_v53 = vpop.permute.xlu1 %870  ;;  %v951_v2 = vpop.permute.xlu0 %950 }
 0x2ed   :  { %v1000_v44 = vmul.f32 %v1179_v25, %v871_v53  ;;  %v1001_v17 = vmul.f32 %v1180_v26, %v871_v53  ;;  %v1026_v7 = vmul.f32 %v1181_v12, %v951_v2  ;;  %v1027_v21 = vmul.f32 %v1182_v20, %v951_v2  ;;  %v1205_v25 = vld [vmem:[#allocation2 + $0x1e0] sm:$0xff]  ;;  %v1206_v26 = vld [vmem:[#allocation2 + $0x1e8] sm:$0xff] }
 0x2ef   :  { %1064 = vst [vmem:[#allocation5 + $0xf0] sm:$0xff] %v1000_v44 }
 0x2f0   :  { %1065 = vst [vmem:[#allocation5 + $0xf8] sm:$0xff] %v1001_v17 }
 0x2f1   :  { %1090 = vst [vmem:[#allocation5 + $0x1c0] sm:$0xff] %v1026_v7  ;;  %v1207_v7 = vld [vmem:[#allocation2 + $0x1f0] sm:$0xff] }
 0x2f2   :  { %1091 = vst [vmem:[#allocation5 + $0x1c8] sm:$0xff] %v1027_v21  ;;  %v1208_v21 = vld [vmem:[#allocation2 + $0x1f8] sm:$0xff] }
 0x2f3   :  { %1153 = vset.pattern.permute.xlu2 %v1610_v27  ;;  %v1188_v27 = vld [vmem:[#allocation2 + $0x138] sm:$0xff] }
 0x2f5   :  { %v878_v22 = vpop.permute.xlu2 %877 }
 0x2f6   :  { %v1002_v60 = vmul.f32 %v1183_v56, %v878_v22  ;;  %v1003_v19 = vmul.f32 %v1184_v51, %v878_v22 }
 0x2f8   :  { %1066 = vst [vmem:[#allocation5 + $0x100] sm:$0xff] %v1002_v60 }
 0x2f9   :  { %1067 = vst [vmem:[#allocation5 + $0x108] sm:$0xff] %v1003_v19 }
 0x2fb   :  { %968 = vperm.xlu2 %1153, %v1629_v32  }
 0x2fc   :  { %v884_v23 = vpop.permute.xlu1 %883 }
 0x2fd   :  { %v1004_v39 = vmul.f32 %v1185_v61, %v884_v23  ;;  %v1005_v33 = vmul.f32 %v1186_v8, %v884_v23 }
 0x2ff   :  { %1068 = vst [vmem:[#allocation5 + $0x110] sm:$0xff] %v1004_v39 }
 0x300   :  { %1069 = vst [vmem:[#allocation5 + $0x118] sm:$0xff] %v1005_v33 }
 0x305   :  { %v896_v36 = vpop.permute.xlu2 %895 }
 0x306   :  { %v1008_v18 = vmul.f32 %v1187_v37, %v896_v36  ;;  %v1009_v47 = vmul.f32 %v1188_v27, %v896_v36 }
 0x308   :  { %1072 = vst [vmem:[#allocation5 + $0x130] sm:$0xff] %v1008_v18 }
 0x309   :  { %1073 = vst [vmem:[#allocation5 + $0x138] sm:$0xff] %v1009_v47 }
 0x30c   :  { %v902_v48 = vpop.permute.xlu1 %901 }
 0x30d   :  { %v1010_v35 = vmul.f32 %v1189_v41, %v902_v48  ;;  %v1011_v31 = vmul.f32 %v1190_v38, %v902_v48 }
 0x30f   :  { %1074 = vst [vmem:[#allocation5 + $0x140] sm:$0xff] %v1010_v35 }
 0x310   :  { %1075 = vst [vmem:[#allocation5 + $0x148] sm:$0xff] %v1011_v31 }
 0x315   :  { %v908_v32 = vpop.permute.xlu2 %907 }
 0x316   :  { %v1012_v4 = vmul.f32 %v1191_v3, %v908_v32  ;;  %v1013_v34 = vmul.f32 %v1192_v63, %v908_v32 }
 0x318   :  { %1076 = vst [vmem:[#allocation5 + $0x150] sm:$0xff] %v1012_v4 }
 0x319   :  { %1077 = vst [vmem:[#allocation5 + $0x158] sm:$0xff] %v1013_v34 }
 0x31c   :  { %v914_v24 = vpop.permute.xlu1 %913 }
 0x31d   :  { %v1014_v59 = vmul.f32 %v1193_v58, %v914_v24  ;;  %v1015_v11 = vmul.f32 %v1194_v10, %v914_v24 }
 0x31f   :  { %1078 = vst [vmem:[#allocation5 + $0x160] sm:$0xff] %v1014_v59 }
 0x320   :  { %1079 = vst [vmem:[#allocation5 + $0x168] sm:$0xff] %v1015_v11 }
 0x325   :  { %v927_v40 = vpop.permute.xlu2 %926 }
 0x326   :  { %v1018_v30 = vmul.f32 %v1195_v13, %v927_v40  ;;  %v1019_v43 = vmul.f32 %v1196_v16, %v927_v40 }
 0x328   :  { %1082 = vst [vmem:[#allocation5 + $0x180] sm:$0xff] %v1018_v30 }
 0x329   :  { %1083 = vst [vmem:[#allocation5 + $0x188] sm:$0xff] %v1019_v43 }
 0x32c   :  { %v933_v57 = vpop.permute.xlu1 %932 }
 0x32d   :  { %v1020_v50 = vmul.f32 %v1197_v9, %v933_v57  ;;  %v1021_v62 = vmul.f32 %v1198_v45, %v933_v57 }
 0x32f   :  { %1084 = vst [vmem:[#allocation5 + $0x190] sm:$0xff] %v1020_v50 }
 0x330   :  { %1085 = vst [vmem:[#allocation5 + $0x198] sm:$0xff] %v1021_v62 }
 0x335   :  { %v939_v1 = vpop.permute.xlu2 %938 }
 0x336   :  { %v1022_v14 = vmul.f32 %v1199_v49, %v939_v1  ;;  %v1023_v15 = vmul.f32 %v1200_v0, %v939_v1 }
 0x338   :  { %1086 = vst [vmem:[#allocation5 + $0x1a0] sm:$0xff] %v1022_v14 }
 0x339   :  { %1087 = vst [vmem:[#allocation5 + $0x1a8] sm:$0xff] %v1023_v15 }
 0x33c   :  { %v945_v42 = vpop.permute.xlu1 %944 }
 0x33d   :  { %v1024_v55 = vmul.f32 %v1201_v28, %v945_v42  ;;  %v1025_v52 = vmul.f32 %v1202_v54, %v945_v42 }
 0x33f   :  { %1088 = vst [vmem:[#allocation5 + $0x1b0] sm:$0xff] %v1024_v55 }
 0x340   :  { %1089 = vst [vmem:[#allocation5 + $0x1b8] sm:$0xff] %v1025_v52 }
 0x345   :  { %v957_v5 = vpop.permute.xlu2 %956 }
 0x346   :  { %v1028_v29 = vmul.f32 %v1203_v6, %v957_v5  ;;  %v1029_v53 = vmul.f32 %v1204_v46, %v957_v5 }
 0x348   :  { %1092 = vst [vmem:[#allocation5 + $0x1d0] sm:$0xff] %v1028_v29 }
 0x349   :  { %1093 = vst [vmem:[#allocation5 + $0x1d8] sm:$0xff] %v1029_v53 }
 0x34c   :  { %v963_v2 = vpop.permute.xlu1 %962 }
 0x34d   :  { %v1030_v44 = vmul.f32 %v1205_v25, %v963_v2  ;;  %v1031_v17 = vmul.f32 %v1206_v26, %v963_v2 }
 0x34f   :  { %1094 = vst [vmem:[#allocation5 + $0x1e0] sm:$0xff] %v1030_v44 }
 0x350   :  { %1095 = vst [vmem:[#allocation5 + $0x1e8] sm:$0xff] %v1031_v17 }
 0x355   :  { %v969_v12 = vpop.permute.xlu2 %968 }
 0x356   :  { %v1032_v20 = vmul.f32 %v1207_v7, %v969_v12  ;;  %v1033_v22 = vmul.f32 %v1208_v21, %v969_v12 }
 0x358   :  { %1096 = vst [vmem:[#allocation5 + $0x1f0] sm:$0xff] %v1032_v20 }
 0x359   :  { %1097 = vst [vmem:[#allocation5 + $0x1f8] sm:$0xff] %v1033_v22 }
 0x35a   :  { %1110 = dma.vmem_to_hbm [thread:$0]  %s1103_s18, 8192, %s1105_s21, [#allocation4], %s1262_s23, %s1262_s23, %s1263_s24  }
 0x35b   :  { %1259 = dma.done.wait [#allocation4], 8192  }
 0x35c   :  { %1260 = vsyncadd [#allocation4], 4294959104 }
 0x35d   :  { %1115 = vsyncpa [#allocation3], 1 }
 0x35e   :  { %1116 = vsyncpa [#allocation4], 1 }

</bundles_post_ra>
